<compile_context>
chip_gen: v7x
topology: tpu7x:2x2x1
jax: 0.10.0
libtpu: 0.0.40
codegen_flags: <defaults>
</compile_context>

<pallas_src>
import functools

import jax
import jax.numpy as jnp
from jax.experimental import pallas as pl
from jax.experimental.pallas import tpu as pltpu

EPS = 1e-5
NEG_SLOPE = 0.01   # nn.LeakyReLU default
LANES = 128
SUBL = 16          # worst-case sublane packing (bf16) for aligned slab sections


def _round_up(a, b):
    return ((a + b - 1) // b) * b


def _bn_lrelu(h, gamma, beta, inv_n):
    """Training-mode BatchNorm1d (biased batch stats, two-pass) + LeakyReLU."""
    mean = jnp.sum(h, axis=0, keepdims=True) * inv_n
    c = h - mean
    var = jnp.sum(c * c, axis=0, keepdims=True) * inv_n
    h = c * jax.lax.rsqrt(var + EPS) * gamma + beta
    # LeakyReLU as a single max (valid for 0 < slope < 1).
    return jnp.maximum(h, NEG_SLOPE * h)


def _mlp_kernel(x_ref, slab_ref, o_ref, *, f, r_w2, r_w3, r_vec, n_rows):
    inv_n = jnp.float32(1.0 / n_rows)

    x = x_ref[...]                                          # (N, F)    bf16
    w1 = slab_ref[pl.ds(0, f), :]                           # (F, 128)  bf16
    w2 = slab_ref[pl.ds(r_w2, LANES), :]                    # (128,128) bf16
    w3 = slab_ref[pl.ds(r_w3, LANES), :]                    # (128,128) bf16
    vec = slab_ref[pl.ds(r_vec, 8), :].astype(jnp.float32)  # (8, 128)  -> f32
    b3 = vec[0:1, :]
    g1 = vec[1:2, :]
    be1 = vec[2:3, :]
    g2 = vec[3:4, :]
    be2 = vec[4:5, :]

    # block1: Linear (bias folded away by BN) -> BatchNorm -> LeakyReLU
    h = jnp.dot(x, w1, preferred_element_type=jnp.float32)
    h = _bn_lrelu(h, g1, be1, inv_n)

    # block2: Linear -> BatchNorm -> LeakyReLU
    h = jnp.dot(h.astype(jnp.bfloat16), w2, preferred_element_type=jnp.float32)
    h = _bn_lrelu(h, g2, be2, inv_n)

    # last_layer: Linear, lane-dense (padded) output; padded lanes are exact 0.
    out = jnp.dot(h.astype(jnp.bfloat16), w3, preferred_element_type=jnp.float32) + b3
    o_ref[...] = out.astype(o_ref.dtype)


def pack_params(params, output_size, *, dtype=jnp.bfloat16):
    """One-time packing of module parameters into a single (rows, 128) slab.

    Slab layout (sublane-aligned row sections, all 128 lanes wide, zero-padded):
      rows [0, F)              : w1  (F x h1 real)
      rows [r_w2, r_w2+128)    : w2  (h1 x h2 real)
      rows [r_w3, r_w3+128)    : w3  (h2 x output_size real)
      rows [r_vec, r_vec+8)    : b3, g1, be1, g2, be2 (one row each), 3 spare rows
    b1 / b2 are intentionally NOT packed (cancelled by training-mode BatchNorm).
    """
    w1, w2, w3 = params["w1"], params["w2"], params["w3"]
    f, h1 = w1.shape
    h2 = w2.shape[1]
    assert h1 <= LANES and h2 <= LANES and output_size <= LANES, \
        "single-slab layout assumes hidden/output widths <= 128"

    r_w2 = _round_up(f, SUBL)
    r_w3 = r_w2 + LANES
    r_vec = r_w3 + LANES
    rows = r_vec + 8

    slab = jnp.zeros((rows, LANES), jnp.float32)
    slab = slab.at[:f, :h1].set(w1)
    slab = slab.at[r_w2:r_w2 + h1, :h2].set(w2)
    slab = slab.at[r_w3:r_w3 + h2, :output_size].set(w3)
    slab = slab.at[r_vec + 0, :output_size].set(params["b3"].reshape(-1))
    slab = slab.at[r_vec + 1, :h1].set(params["g1"].reshape(-1))
    slab = slab.at[r_vec + 2, :h1].set(params["be1"].reshape(-1))
    slab = slab.at[r_vec + 3, :h2].set(params["g2"].reshape(-1))
    slab = slab.at[r_vec + 4, :h2].set(params["be2"].reshape(-1))
    slab = slab.astype(dtype)

    return dict(slab=slab, f=f, r_w2=r_w2, r_w3=r_w3, r_vec=r_vec,
                out_size=output_size, dtype=dtype)


def mlp_1_normalized_small(x, packed, *, return_padded=False):
    """x: (N, input_size) float32 (or already bf16). packed: output of pack_params.

    If return_padded=True the (N, 128) lane-dense buffer is returned directly
    (padded lanes are exact zeros), letting the caller skip the slice copy.
    """
    n, f = x.shape
    assert f == packed["f"]
    slab = packed["slab"]
    xq = x.astype(packed["dtype"])

    kernel = functools.partial(
        _mlp_kernel, f=f, r_w2=packed["r_w2"], r_w3=packed["r_w3"],
        r_vec=packed["r_vec"], n_rows=n)
    vmem = pl.BlockSpec(memory_space=pltpu.MemorySpace.VMEM)

    in_bytes = xq.size * 2 + slab.size * 2
    out_bytes = n * LANES * 4
    flops = 2 * n * (f * LANES + LANES * LANES + LANES * LANES)

    out_padded = pl.pallas_call(
        kernel,
        out_shape=jax.ShapeDtypeStruct((n, LANES), jnp.float32),
        in_specs=[vmem, vmem],
        out_specs=vmem,
        compiler_params=pltpu.CompilerParams(
            vmem_limit_bytes=int(min(64 << 20,
                                     max(4 << 20, 4 * (in_bytes + out_bytes))))),
        cost_estimate=pl.CostEstimate(flops=flops, transcendentals=2 * LANES,
                                      bytes_accessed=in_bytes + out_bytes),
    )(xq, slab)

    if return_padded:
        return out_padded
    return out_padded[:, :packed["out_size"]]


def init_params(key, input_size, output_size):
    """Deterministic synthetic parameters with the same shapes as the PyTorch module."""
    h1 = input_size // 2
    h2 = input_size // 4
    ks = jax.random.split(key, 6)

    def lin(kw, kb, fan_in, fan_out):
        bound = 1.0 / jnp.sqrt(fan_in)
        w = jax.random.uniform(kw, (fan_in, fan_out), jnp.float32, -bound, bound)
        b = jax.random.uniform(kb, (1, fan_out), jnp.float32, -bound, bound)
        return w, b

    w1, b1 = lin(ks[0], ks[1], input_size, h1)
    w2, b2 = lin(ks[2], ks[3], h1, h2)
    w3, b3 = lin(ks[4], ks[5], h2, output_size)

    return dict(
        w1=w1, b1=b1, g1=jnp.ones((1, h1), jnp.float32), be1=jnp.zeros((1, h1), jnp.float32),
        w2=w2, b2=b2, g2=jnp.ones((1, h2), jnp.float32), be2=jnp.zeros((1, h2), jnp.float32),
        w3=w3, b3=b3,
    )


def reference_forward(x, params):
    """Pure-JAX f32 reference matching the full PyTorch forward (biases included)."""
    def bn_lrelu(h, g, be):
        m = h.mean(0, keepdims=True)
        v = ((h - m) ** 2).mean(0, keepdims=True)
        h = (h - m) / jnp.sqrt(v + EPS) * g + be
        return jnp.where(h >= 0, h, NEG_SLOPE * h)

    h = bn_lrelu(x @ params["w1"] + params["b1"], params["g1"], params["be1"])
    h = bn_lrelu(h @ params["w2"] + params["b2"], params["g2"], params["be2"])
    return h @ params["w3"] + params["b3"]


def reference_forward_matched(x, params):
    """Pure-JAX reference at the kernel's precision (bf16 matmul operands, f32 BN)."""
    bf16 = jnp.bfloat16

    def lin(h, w, b):
        return jnp.dot(h.astype(bf16), w.astype(bf16),
                       preferred_element_type=jnp.float32) + b

    def bn_lrelu(h, g, be):
        m = jnp.mean(h, 0, keepdims=True)
        v = jnp.mean((h - m) ** 2, 0, keepdims=True)
        h = (h - m) * jax.lax.rsqrt(v + EPS) * g + be
        return jnp.maximum(h, NEG_SLOPE * h)

    h = bn_lrelu(lin(x, params["w1"], params["b1"]), params["g1"], params["be1"])
    h = bn_lrelu(lin(h, params["w2"], params["b2"]), params["g2"], params["be2"])
    return lin(h, params["w3"], params["b3"])


if __name__ == "__main__":
    key = jax.random.PRNGKey(0)
    k_x, k_p = jax.random.split(key)

    batch = 8
    input_size = 32
    output_size = 8

    x = jax.random.normal(k_x, (batch, input_size), jnp.float32)
    params = init_params(k_p, input_size, output_size)
    packed = pack_params(params, output_size)

    out = mlp_1_normalized_small(x, packed)
    out = jax.block_until_ready(out)
    assert out.shape == (batch, output_size)

    # Kernel vs matched-precision (bf16 MXU operands, f32 BN) reference: tight.
    ref_matched = reference_forward_matched(x, params)
    assert jnp.allclose(out, ref_matched, atol=2e-3, rtol=2e-3), \
        "mismatch vs matched-precision reference"

    # Kernel vs exact f32 PyTorch-semantics reference: bf16-level tolerance.
    ref = reference_forward(x, params)
    assert jnp.allclose(out, ref, atol=5e-2, rtol=5e-2), "mismatch vs f32 reference"

    print("KERNEL_OK")
</pallas_src>

<mosaic_0001>
module attributes {stable_mosaic.version = 11 : i64} {
  func.func @_mlp_kernel(%arg0: memref<8x32xbf16, #tpu.memory_space<vmem>>, %arg1: memref<296x128xbf16, #tpu.memory_space<vmem>>, %arg2: memref<8x128xf32, #tpu.memory_space<vmem>>) attributes {dimension_semantics = [], scalar_prefetch = 0 : i64, scratch_operands = 0 : i64, tpu.core_type = #tpu.core_type<tc>} {
    %c0 = arith.constant 0 : index
    %c0_0 = arith.constant 0 : index
    %0 = vector.load %arg0[%c0, %c0_0] : memref<8x32xbf16, #tpu.memory_space<vmem>>, vector<8x32xbf16>
    %c0_1 = arith.constant 0 : index
    %c0_2 = arith.constant 0 : index
    %1 = vector.load %arg1[%c0_1, %c0_2] : memref<296x128xbf16, #tpu.memory_space<vmem>>, vector<32x128xbf16>
    %c32 = arith.constant 32 : index
    %c0_3 = arith.constant 0 : index
    %2 = vector.load %arg1[%c32, %c0_3] : memref<296x128xbf16, #tpu.memory_space<vmem>>, vector<128x128xbf16>
    %c160 = arith.constant 160 : index
    %c0_4 = arith.constant 0 : index
    %3 = vector.load %arg1[%c160, %c0_4] : memref<296x128xbf16, #tpu.memory_space<vmem>>, vector<128x128xbf16>
    %c288 = arith.constant 288 : index
    %c0_5 = arith.constant 0 : index
    %4 = vector.load %arg1[%c288, %c0_5] : memref<296x128xbf16, #tpu.memory_space<vmem>>, vector<8x128xbf16>
    %5 = arith.extf %4 : vector<8x128xbf16> to vector<8x128xf32>
    %6 = vector.extract_strided_slice %5 {offsets = [0, 0], sizes = [1, 128], strides = [1, 1]} : vector<8x128xf32> to vector<1x128xf32>
    %7 = vector.extract_strided_slice %5 {offsets = [1, 0], sizes = [1, 128], strides = [1, 1]} : vector<8x128xf32> to vector<1x128xf32>
    %8 = vector.extract_strided_slice %5 {offsets = [2, 0], sizes = [1, 128], strides = [1, 1]} : vector<8x128xf32> to vector<1x128xf32>
    %9 = vector.extract_strided_slice %5 {offsets = [3, 0], sizes = [1, 128], strides = [1, 1]} : vector<8x128xf32> to vector<1x128xf32>
    %10 = vector.extract_strided_slice %5 {offsets = [4, 0], sizes = [1, 128], strides = [1, 1]} : vector<8x128xf32> to vector<1x128xf32>
    %cst = arith.constant dense<0.000000e+00> : vector<8x128xf32>
    %11 = tpu.matmul %0, %1, %cst {dimension_numbers = #tpu.dot_dimension_numbers<[1], [0], [0], [1], [0, 0, 1, 1], [], []>} : vector<8x32xbf16>, vector<32x128xbf16>, vector<8x128xf32> -> vector<8x128xf32>
    %cst_6 = arith.constant dense<0.000000e+00> : vector<128xf32>
    %12 = vector.multi_reduction <add>, %11, %cst_6 [0] : vector<8x128xf32> to vector<128xf32>
    %13 = vector.shape_cast %12 : vector<128xf32> to vector<1x128xf32>
    %cst_7 = arith.constant 1.250000e-01 : f32
    %14 = vector.broadcast %cst_7 : f32 to vector<1x128xf32>
    %15 = arith.mulf %13, %14 : vector<1x128xf32>
    %16 = vector.broadcast %15 : vector<1x128xf32> to vector<8x128xf32>
    %17 = arith.subf %11, %16 : vector<8x128xf32>
    %18 = arith.mulf %17, %17 : vector<8x128xf32>
    %cst_8 = arith.constant dense<0.000000e+00> : vector<128xf32>
    %19 = vector.multi_reduction <add>, %18, %cst_8 [0] : vector<8x128xf32> to vector<128xf32>
    %20 = vector.shape_cast %19 : vector<128xf32> to vector<1x128xf32>
    %cst_9 = arith.constant 1.250000e-01 : f32
    %21 = vector.broadcast %cst_9 : f32 to vector<1x128xf32>
    %22 = arith.mulf %20, %21 : vector<1x128xf32>
    %cst_10 = arith.constant 9.99999974E-6 : f32
    %23 = vector.broadcast %cst_10 : f32 to vector<1x128xf32>
    %24 = arith.addf %22, %23 : vector<1x128xf32>
    %25 = math.rsqrt %24 : vector<1x128xf32>
    %26 = vector.broadcast %25 : vector<1x128xf32> to vector<8x128xf32>
    %27 = arith.mulf %17, %26 : vector<8x128xf32>
    %28 = vector.broadcast %7 : vector<1x128xf32> to vector<8x128xf32>
    %29 = arith.mulf %27, %28 : vector<8x128xf32>
    %30 = vector.broadcast %8 : vector<1x128xf32> to vector<8x128xf32>
    %31 = arith.addf %29, %30 : vector<8x128xf32>
    %cst_11 = arith.constant 0.00999999977 : f32
    %32 = vector.broadcast %cst_11 : f32 to vector<8x128xf32>
    %33 = arith.mulf %32, %31 : vector<8x128xf32>
    %34 = arith.maximumf %31, %33 : vector<8x128xf32>
    %35 = arith.truncf %34 : vector<8x128xf32> to vector<8x128xbf16>
    %cst_12 = arith.constant dense<0.000000e+00> : vector<8x128xf32>
    %36 = tpu.matmul %35, %2, %cst_12 {dimension_numbers = #tpu.dot_dimension_numbers<[1], [0], [0], [1], [0, 0, 1, 1], [], []>} : vector<8x128xbf16>, vector<128x128xbf16>, vector<8x128xf32> -> vector<8x128xf32>
    %cst_13 = arith.constant dense<0.000000e+00> : vector<128xf32>
    %37 = vector.multi_reduction <add>, %36, %cst_13 [0] : vector<8x128xf32> to vector<128xf32>
    %38 = vector.shape_cast %37 : vector<128xf32> to vector<1x128xf32>
    %cst_14 = arith.constant 1.250000e-01 : f32
    %39 = vector.broadcast %cst_14 : f32 to vector<1x128xf32>
    %40 = arith.mulf %38, %39 : vector<1x128xf32>
    %41 = vector.broadcast %40 : vector<1x128xf32> to vector<8x128xf32>
    %42 = arith.subf %36, %41 : vector<8x128xf32>
    %43 = arith.mulf %42, %42 : vector<8x128xf32>
    %cst_15 = arith.constant dense<0.000000e+00> : vector<128xf32>
    %44 = vector.multi_reduction <add>, %43, %cst_15 [0] : vector<8x128xf32> to vector<128xf32>
    %45 = vector.shape_cast %44 : vector<128xf32> to vector<1x128xf32>
    %cst_16 = arith.constant 1.250000e-01 : f32
    %46 = vector.broadcast %cst_16 : f32 to vector<1x128xf32>
    %47 = arith.mulf %45, %46 : vector<1x128xf32>
    %cst_17 = arith.constant 9.99999974E-6 : f32
    %48 = vector.broadcast %cst_17 : f32 to vector<1x128xf32>
    %49 = arith.addf %47, %48 : vector<1x128xf32>
    %50 = math.rsqrt %49 : vector<1x128xf32>
    %51 = vector.broadcast %50 : vector<1x128xf32> to vector<8x128xf32>
    %52 = arith.mulf %42, %51 : vector<8x128xf32>
    %53 = vector.broadcast %9 : vector<1x128xf32> to vector<8x128xf32>
    %54 = arith.mulf %52, %53 : vector<8x128xf32>
    %55 = vector.broadcast %10 : vector<1x128xf32> to vector<8x128xf32>
    %56 = arith.addf %54, %55 : vector<8x128xf32>
    %cst_18 = arith.constant 0.00999999977 : f32
    %57 = vector.broadcast %cst_18 : f32 to vector<8x128xf32>
    %58 = arith.mulf %57, %56 : vector<8x128xf32>
    %59 = arith.maximumf %56, %58 : vector<8x128xf32>
    %60 = arith.truncf %59 : vector<8x128xf32> to vector<8x128xbf16>
    %cst_19 = arith.constant dense<0.000000e+00> : vector<8x128xf32>
    %61 = tpu.matmul %60, %3, %cst_19 {dimension_numbers = #tpu.dot_dimension_numbers<[1], [0], [0], [1], [0, 0, 1, 1], [], []>} : vector<8x128xbf16>, vector<128x128xbf16>, vector<8x128xf32> -> vector<8x128xf32>
    %62 = vector.broadcast %6 : vector<1x128xf32> to vector<8x128xf32>
    %63 = arith.addf %61, %62 : vector<8x128xf32>
    %c0_20 = arith.constant 0 : index
    %c0_21 = arith.constant 0 : index
    %64 = vector.load %arg2[%c0_20, %c0_21] : memref<8x128xf32, #tpu.memory_space<vmem>>, vector<8x128xf32>
    tpu.vector_store %arg2[%c0_20, %c0_21], %63 {strides = array<i32>} : memref<8x128xf32, #tpu.memory_space<vmem>>, vector<8x128xf32>,
    return
  }
}

</mosaic_0001>

<bundles_post_ra>
// kernel: tpu_custom_call.1
= control target key start
LH: loop header
LB: loop body
LE: loop exit
PB: predicated region body
PF: predicated region fallthrough
CT: control target
= control target key end

     0   :  { %7 = vsyncpa [#allocation3], 0  ;;  %s684_s0 = inlined_call_operand.hbm [shape: bf16[8,32], index: 0, kind: input, shape index: {}]   ;;  %s685_s1 = inlined_call_operand.hbm [shape: bf16[296,128], index: 1, kind: input, shape index: {}]   ;;  %s686_s2 = inlined_call_operand.hbm [shape: f32[8,128], index: 2, kind: output, shape index: {}]  }
   0x1   :  { %8 = vsyncpa [#allocation6], 0 }
   0x2   :  { %9 = vsyncpa [#allocation4], 0  ;;  %s584_s9 = smov [#allocation2]   ;;  %s585_s11 = smov [#allocation5]  }
   0x3   :  { %s16_s10 = sshll.u32 %s584_s9, 4  ;;  %s25_s12 = sshll.u32 %s585_s11, 4  ;;  %s17_s10 = int_to_ptr.vmem [resolvable:$true] %s16_s10  ;;  %s606_s12 = int_to_ptr.vmem [resolvable:$true] %s25_s12 }
   0x4   :  { %s512_s15 = scalar_lea.hbm %s684_s0, 64 }
   0x5   :  { %p513_p0 = scmp.ne.s32.totalorder %s684_s0, %s512_s15  ;;  %p516_p1 = scmp.lt.u32.totalorder %s512_s15, %s684_s0 }
   0x7   :  { %p518_p2 = pnand %p516_p1, %p513_p0 }
   0x9   :  { %521 = shalt.err (!%p518_p2)
}
   0xa   :  { %s522_s20 = scalar_lea.vmem %s17_s10, 64  ;;  %p527_p4 = scmp.lt.s32.totalorder %s17_s10, %s17_s10 }
   0xb   :  { %p523_p3 = scmp.ne.s32.totalorder %s17_s10, %s522_s20  ;;  %p528_p5 = scmp.lt.s32.totalorder %s522_s20, %s522_s20 }
   0xd   :  { %p529_p6 = por %p528_p5, %p527_p4 }
   0xf   :  { %p530_p7 = pnand %p529_p6, %p523_p3 }
  0x11   :  { %533 = shalt.err (!%p530_p7)
}
  0x12   :  { %19 = dma.hbm_to_vmem [thread:$0]  %s684_s0, 64, %s17_s10, [#allocation3]  }
  0x13   :  { %s534_s25 = scalar_lea.hbm %s685_s1, 2368 }
  0x14   :  { %p535_p8 = scmp.ne.s32.totalorder %s685_s1, %s534_s25  ;;  %p538_p9 = scmp.lt.u32.totalorder %s534_s25, %s685_s1 }
  0x16   :  { %p540_p10 = pnand %p538_p9, %p535_p8 }
  0x18   :  { %543 = shalt.err (!%p540_p10)
}
  0x19   :  { %s544_s30 = scalar_lea.vmem %s606_s12, 2368  ;;  %p549_p12 = scmp.lt.s32.totalorder %s606_s12, %s606_s12 }
  0x1a   :  { %p545_p11 = scmp.ne.s32.totalorder %s606_s12, %s544_s30  ;;  %p550_p13 = scmp.lt.s32.totalorder %s544_s30, %s544_s30 }
  0x1c   :  { %p551_p0 = por %p550_p13, %p549_p12 }
  0x1e   :  { %p552_p1 = pnand %p551_p0, %p545_p11 }
  0x20   :  { %555 = shalt.err (!%p552_p1)
}
  0x21   :  { %s586_s0 = smov 64   ;;  %s587_s3 = smov 4  }
  0x22   :  { %31 = dma.hbm_to_vmem [thread:$0]  %s685_s1, 2368, %s606_s12, [#allocation6], %s586_s0, %s586_s0, %s587_s3  }
  0x23   :  { %578 = dma.done.wait [#allocation3], 64  }
  0x24   :  { %579 = vsyncadd [#allocation3], 4294967232 }
  0x25   :  { %580 = dma.done.wait [#allocation6], 2368  }
  0x26   :  { %581 = vsyncadd [#allocation6], 4294964928  ;;  %v588_v0 = vmov 0.0   ;;  %vm589_vm0 = vmmov 0   ;;  %v490_v1 = vld [vmem:[#allocation5] sm:$0xff]   ;;  %v491_v2 = vld [vmem:[#allocation5 + $0x8] sm:$0xff]   ;;  %v153_v32 = vlaneseq }
  0x27   :  { %435 = vmatprep.subr.bf16.mxu0 %v588_v0  ;;  %439 = vmatprep.mubr.msk.bf16.mxu0 %vm589_vm0, %v588_v0  ;;  %vm90_vm1 = vcmask 261120   ;;  %v39_v3 = vld [vmem:[#allocation2] sm:$0xf]  ;;  %v492_v4 = vld [vmem:[#allocation5 + $0x10] sm:$0xff]   ;;  %v494_v6 = vld [vmem:[#allocation5 + $0x20] sm:$0xff]   ;;  %s590_s1 = smov [#allocation7]  }
  0x28   :  { %443 = vmatprep.subr.bf16.mxu1 %v588_v0  ;;  %459 = vmatprep.mubr.msk.bf16.mxu1 %vm589_vm0, %v588_v0  ;;  %v493_v5 = vld [vmem:[#allocation5 + $0x18] sm:$0xff]   ;;  %v495_v7 = vld [vmem:[#allocation5 + $0x28] sm:$0xff]   ;;  %v496_v8 = vld [vmem:[#allocation5 + $0x30] sm:$0xff]   ;;  %v651_v34 = vshrl.u32 %v153_v32, 7  ;;  %s385_s6 = sshll.u32 %s590_s1, 4  ;;  %s386_s6 = int_to_ptr.vmem [resolvable:$true] %s385_s6 }
  0x29   :  { %436 = vmatpush3.bf16.msra.mxu0 %v490_v1  ;;  %444 = vmatpush3.bf16.msra.mxu1 %v492_v4  ;;  %v497_v9 = vld [vmem:[#allocation5 + $0x38] sm:$0xff]   ;;  %v498_v10 = vld [vmem:[#allocation5 + $0x40] sm:$0xff]   ;;  %v499_v11 = vld [vmem:[#allocation5 + $0x48] sm:$0xff]   ;;  %s556_s7 = scalar_lea.vmem %s386_s6, 128  ;;  %p561_p3 = scmp.lt.s32.totalorder %s386_s6, %s386_s6 }
  0x2a   :  { %437 = vmatprep.subr.bf16.mxu0 %v588_v0  ;;  %445 = vmatprep.subr.bf16.mxu1 %v588_v0  ;;  %v76_v35 = vld [vmem:[#allocation5 + $0x90] sm:$0xf]  ;;  %v155_v37 = vsub.s32 1, %v651_v34  ;;  %v160_v38 = vsub.s32 2, %v651_v34  ;;  %v501_v49 = vld [vmem:[#allocation5 + $0x58] sm:$0xff]   ;;  %v502_v50 = vld [vmem:[#allocation5 + $0x60] sm:$0xff]   ;;  %p557_p2 = scmp.ne.s32.totalorder %s386_s6, %s556_s7  ;;  %p562_p4 = scmp.lt.s32.totalorder %s556_s7, %s556_s7 }
  0x2b   :  { %v653_v36 = vunpack.c.l.bf16 %v76_v35  ;;  %v500_v48 = vld [vmem:[#allocation5 + $0x50] sm:$0xff]   ;;  %v503_v51 = vld [vmem:[#allocation5 + $0x68] sm:$0xff]   ;;  %v505_v53 = vld [vmem:[#allocation5 + $0x78] sm:$0xff]  }
  0x2c   :  { %v504_v52 = vld [vmem:[#allocation5 + $0x70] sm:$0xff]   ;;  %v506_v54 = vld [vmem:[#allocation5 + $0x80] sm:$0xff]   ;;  %v507_v55 = vld [vmem:[#allocation5 + $0x88] sm:$0xff]   ;;  %p563_p5 = por %p562_p4, %p561_p3 }
  0x2d   :  { %438 = vmatpush3.bf16.msra.mxu0 %v491_v2  ;;  %446 = vmatpush3.bf16.msra.mxu1 %v493_v5  ;;  %v156_v39 = vrot.slane %v653_v36, %v155_v37  ;;  %v161_v42 = vrot.slane %v653_v36, %v160_v38 }
  0x2e   :  { %463 = vmatprep.subr.bf16.mxu0 %v588_v0  ;;  %447 = vmatprep.subr.bf16.mxu1 %v588_v0  ;;  %p564_p6 = pnand %p563_p5, %p557_p2 }
  0x30   :  { %440 = vmatmul.mubr.msk.bf16.vlgmr.msra.gmra.mrb[0].mxu0 %vm90_vm1, %v39_v3 }
  0x31   :  { %479 = vmatprep.mubr.msk.bf16.mxu0 %vm589_vm0, %v588_v0  ;;  %448 = vmatpush3.bf16.msra.mxu1 %v494_v6 }
  0x32   :  { %449 = vmatprep.subr.bf16.mxu1 %v588_v0  ;;  %464 = vmatpush3.bf16.msra.mxu0 %v500_v48 }
  0x33   :  { %465 = vmatprep.subr.bf16.mxu0 %v588_v0 }
  0x35   :  { %450 = vmatpush3.bf16.msra.mxu1 %v495_v7 }
  0x36   :  { %451 = vmatprep.subr.bf16.mxu1 %v588_v0  ;;  %466 = vmatpush3.bf16.msra.mxu0 %v501_v49 }
  0x37   :  { %467 = vmatprep.subr.bf16.mxu0 %v588_v0 }
  0x39   :  { %452 = vmatpush3.bf16.msra.mxu1 %v496_v8 }
  0x3a   :  { %453 = vmatprep.subr.bf16.mxu1 %v588_v0  ;;  %468 = vmatpush3.bf16.msra.mxu0 %v502_v50 }
  0x3b   :  { %469 = vmatprep.subr.bf16.mxu0 %v588_v0 }
  0x3d   :  { %454 = vmatpush3.bf16.msra.mxu1 %v497_v9 }
  0x3e   :  { %455 = vmatprep.subr.bf16.mxu1 %v588_v0  ;;  %470 = vmatpush3.bf16.msra.mxu0 %v503_v51 }
  0x3f   :  { %471 = vmatprep.subr.bf16.mxu0 %v588_v0 }
  0x41   :  { %456 = vmatpush3.bf16.msra.mxu1 %v498_v10 }
  0x42   :  { %457 = vmatprep.subr.bf16.mxu1 %v588_v0  ;;  %472 = vmatpush3.bf16.msra.mxu0 %v504_v52 }
  0x43   :  { %473 = vmatprep.subr.bf16.mxu0 %v588_v0 }
  0x45   :  { %458 = vmatpush3.bf16.msra.mxu1 %v499_v11 }
  0x46   :  { %474 = vmatpush3.bf16.msra.mxu0 %v505_v53 }
  0x47   :  { %475 = vmatprep.subr.bf16.mxu0 %v588_v0 }
  0x4a   :  { %476 = vmatpush3.bf16.msra.mxu0 %v506_v54 }
  0x4b   :  { %477 = vmatprep.subr.bf16.mxu0 %v588_v0 }
  0x4e   :  { %478 = vmatpush3.bf16.msra.mxu0 %v507_v55 }
 0x103   :  { %v128_v12 = vpop.f32.mrb[0].mxu0 }
 0x104   :  { %v134_v13 = vrot.slane %v128_v12, 4  ;;  %v441_v14 = vpop.f32.mrb[1].mxu0 }
 0x105   :  { %v131_v15 = vpop.f32.mrb[2].mxu0  ;;  %v280_v14 = vsub.s32 4, %v651_v34 }
 0x106   :  { %v135_v16 = vadd.f32 %v134_v13, %v128_v12  ;;  %v442_v17 = vpop.f32.mrb[3].mxu0  ;;  %v275_v13 = vsub.s32 3, %v651_v34 }
 0x108   :  { %v136_v18 = vrot.slane %v135_v16, 2  ;;  %v276_v15 = vrot.slane %v653_v36, %v275_v13 }
 0x10a   :  { %v137_v19 = vadd.f32 %v136_v18, %v135_v16  ;;  %v281_v18 = vrot.slane %v653_v36, %v280_v14 }
 0x10c   :  { %v138_v20 = vrot.slane %v137_v19, 1 }
 0x10e   :  { %v139_v21 = vadd.f32 %v138_v20, %v137_v19 }
 0x110   :  { %v140_v22 = vmul.f32 0.125, %v139_v21 }
 0x112   :  { %v141_v23 = vsub.f32 %v128_v12, %v140_v22 }
 0x114   :  { %v142_v24 = vmul.f32 %v141_v23, %v141_v23 }
 0x116   :  { %v143_v25 = vrot.slane %v142_v24, 4 }
 0x118   :  { %v144_v26 = vadd.f32 %v143_v25, %v142_v24  ;;  %v288_v24 = vsub.s32 0, %v651_v34 }
 0x11a   :  { %v145_v27 = vrot.slane %v144_v26, 2  ;;  %v289_v25 = vrot.slane %v653_v36, %v288_v24 }
 0x11c   :  { %v146_v28 = vadd.f32 %v145_v27, %v144_v26 }
 0x11e   :  { %v147_v29 = vrot.slane %v146_v28, 1 }
 0x120   :  { %v148_v30 = vadd.f32 %v147_v29, %v146_v28 }
 0x122   :  { %v149_v31 = vmul.f32 0.125, %v148_v30 }
 0x124   :  { %v150_v33 = vadd.f32 1e-05, %v149_v31 }
 0x126   :  { %508 = vrsqrt.f32 %v150_v33 }
 0x130   :  { %v509_v40 = vpop.eup %508 }
 0x131   :  { %v152_v41 = vmul.f32 %v509_v40, %v141_v23 }
 0x133   :  { %v157_v43 = vmul.f32 %v156_v39, %v152_v41 }
 0x135   :  { %v162_v44 = vadd.f32 %v161_v42, %v157_v43 }
 0x137   :  { %v163_v45 = vmul.f32 0.01, %v162_v44 }
 0x139   :  { %v164_v46 = vmax.f32 %v162_v44, %v163_v45 }
 0x13b   :  { %v165_v47 = vpack.c.bf16 %v164_v46, %v164_v46 }
 0x13d   :  { %460 = vmatmul.mubr.bf16.vlgmr.msra.gmra.mrb[0].mxu1 %v165_v47 }
 0x210   :  { %v248_v56 = vpop.f32.mrb[0].mxu1 }
 0x211   :  { %v254_v57 = vrot.slane %v248_v56, 4  ;;  %v461_v58 = vpop.f32.mrb[1].mxu1 }
 0x212   :  { %v251_v59 = vpop.f32.mrb[2].mxu1 }
 0x213   :  { %v255_v60 = vadd.f32 %v254_v57, %v248_v56  ;;  %v462_v61 = vpop.f32.mrb[3].mxu1 }
 0x215   :  { %v256_v62 = vrot.slane %v255_v60, 2 }
 0x217   :  { %v257_v63 = vadd.f32 %v256_v62, %v255_v60 }
 0x219   :  { %v258_v1 = vrot.slane %v257_v63, 1 }
 0x21b   :  { %v259_v2 = vadd.f32 %v258_v1, %v257_v63 }
 0x21d   :  { %v260_v3 = vmul.f32 0.125, %v259_v2 }
 0x21f   :  { %v261_v4 = vsub.f32 %v248_v56, %v260_v3 }
 0x221   :  { %v262_v5 = vmul.f32 %v261_v4, %v261_v4 }
 0x223   :  { %v263_v6 = vrot.slane %v262_v5, 4 }
 0x225   :  { %v264_v7 = vadd.f32 %v263_v6, %v262_v5 }
 0x227   :  { %v265_v8 = vrot.slane %v264_v7, 2 }
 0x229   :  { %v266_v9 = vadd.f32 %v265_v8, %v264_v7 }
 0x22b   :  { %v267_v10 = vrot.slane %v266_v9, 1 }
 0x22d   :  { %v268_v0 = vadd.f32 %v267_v10, %v266_v9 }
 0x22f   :  { %v269_v11 = vmul.f32 0.125, %v268_v0 }
 0x231   :  { %v270_v12 = vadd.f32 1e-05, %v269_v11 }
 0x233   :  { %510 = vrsqrt.f32 %v270_v12 }
 0x23d   :  { %v511_v16 = vpop.eup %510 }
 0x23e   :  { %v272_v17 = vmul.f32 %v511_v16, %v261_v4 }
 0x240   :  { %v277_v19 = vmul.f32 %v276_v15, %v272_v17 }
 0x242   :  { %v282_v20 = vadd.f32 %v281_v18, %v277_v19 }
 0x244   :  { %v283_v21 = vmul.f32 0.01, %v282_v20 }
 0x246   :  { %v284_v22 = vmax.f32 %v282_v20, %v283_v21 }
 0x248   :  { %v285_v23 = vpack.c.bf16 %v284_v22, %v284_v22 }
 0x24a   :  { %480 = vmatmul.mubr.bf16.vlgmr.msra.gmra.mrb[4].mxu0 %v285_v23 }
 0x31d   :  { %v372_v26 = vpop.f32.mrb[4].mxu0 }
 0x31e   :  { %v373_v27 = vadd.f32 %v372_v26, %v289_v25  ;;  %v481_v28 = vpop.f32.mrb[5].mxu0 }
 0x31f   :  { %v375_v29 = vpop.f32.mrb[6].mxu0 }
 0x320   :  { %378 = vst [vmem:[#allocation7] sm:$0xff] %v373_v27  ;;  %v482_v30 = vpop.f32.mrb[7].mxu0 }
 0x321   :  { %567 = shalt.err (!%p564_p6)
}
 0x322   :  { %s568_s10 = scalar_lea.hbm %s686_s2, 128 }
 0x323   :  { %p569_p7 = scmp.ne.s32.totalorder %s686_s2, %s568_s10  ;;  %p572_p8 = scmp.lt.u32.totalorder %s568_s10, %s686_s2 }
 0x325   :  { %p574_p9 = pnand %p572_p8, %p569_p7 }
 0x327   :  { %577 = shalt.err (!%p574_p9)
}
 0x328   :  { %388 = dma.vmem_to_hbm [thread:$0]  %s386_s6, 128, %s686_s2, [#allocation4]  }
 0x329   :  { %582 = dma.done.wait [#allocation4], 128  }
 0x32a   :  { %583 = vsyncadd [#allocation4], 4294967168 }
 0x32b   :  { %392 = vsyncpa [#allocation3], 1 }
 0x32c   :  { %393 = vsyncpa [#allocation6], 1 }
 0x32d   :  { %394 = vsyncpa [#allocation4], 1 }

</bundles_post_ra>
